<compile_context>
chip_gen: v7x
topology: tpu7x:2x2x1
jax: 0.10.0
libtpu: 0.0.40
codegen_flags: <defaults>
</compile_context>

<pallas_src>
import functools

import numpy as np
import jax
import jax.numpy as jnp
from jax.experimental import pallas as pl
from jax.experimental.pallas import tpu as pltpu


@functools.lru_cache(maxsize=None)
def _pil_bilinear_matrix(out_size: int, in_size: int) -> np.ndarray:
    """Row-stochastic (out_size, in_size) matrix reproducing PIL's separable
    bilinear (triangle) resampling filter, including antialias on downsample."""
    scale = in_size / out_size
    filterscale = max(scale, 1.0)
    support = 1.0 * filterscale          # bilinear filter support = 1.0
    ss = 1.0 / filterscale
    mat = np.zeros((out_size, in_size), np.float64)
    for xx in range(out_size):
        center = (xx + 0.5) * scale
        xmin = int(max(center - support + 0.5, 0.0))
        xmax = int(min(center + support + 0.5, float(in_size)))
        ws = []
        for x in range(xmin, xmax):
            t = (x - center + 0.5) * ss
            ws.append(max(1.0 - abs(t), 0.0))
        wsum = sum(ws)
        for i, x in enumerate(range(xmin, xmax)):
            mat[xx, x] = ws[i] / wsum
    return mat.astype(np.float32)


@functools.lru_cache(maxsize=None)
def _resize_matrices(ih: int, iw: int, oh: int, ow: int):
    """(Rh, RwT) with ToTensor()/255 and forward()/255 folded into Rh."""
    rh = (_pil_bilinear_matrix(oh, ih) * np.float32(1.0 / (255.0 * 255.0))).astype(np.float32)
    rwt = np.ascontiguousarray(_pil_bilinear_matrix(ow, iw).T).astype(np.float32)
    return rh, rwt


def _preprocess_kernel(x_ref, rh_ref, rwt_ref, o_ref):
    # x_ref:   (3, IH, IW) uint8
    # rh_ref:  (OH, IH) f32  (already scaled by 1/255^2)
    # rwt_ref: (IW, OW) f32
    # o_ref:   (OH, OW) f32
    x = x_ref[...].astype(jnp.float32)
    r, g, b = x[0], x[1], x[2]
    # PIL convert('L'): L = (R*19595 + G*38470 + B*7471 + 0x8000) >> 16
    # All intermediates < 2^24, so this f32 computation is bit-exact.
    gray = jnp.floor(
        (r * 19595.0 + g * 38470.0 + b * 7471.0 + 32768.0) * (1.0 / 65536.0)
    )
    # Separable bilinear resize as two MXU matmuls; Rh carries the 1/255^2.
    tmp = jnp.dot(gray, rwt_ref[...], preferred_element_type=jnp.float32)       # (IH, OW)
    o_ref[...] = jnp.dot(rh_ref[...], tmp, preferred_element_type=jnp.float32)  # (OH, OW)


@functools.lru_cache(maxsize=None)
def _build_preprocess_call(batch: int, ih: int, iw: int, oh: int, ow: int):
    return pl.pallas_call(
        _preprocess_kernel,
        out_shape=jax.ShapeDtypeStruct((batch, oh, ow), jnp.float32),
        grid=(batch,),
        in_specs=[
            pl.BlockSpec((None, 3, ih, iw), lambda i: (i, 0, 0, 0)),   # per-frame uint8 tile
            pl.BlockSpec((oh, ih), lambda i: (0, 0)),                  # Rh   (resident)
            pl.BlockSpec((iw, ow), lambda i: (0, 0)),                  # RwT  (resident)
        ],
        # NOTE: OW=84 < 128 lanes -> masked partial stores; negligible at this size.
        out_specs=pl.BlockSpec((None, oh, ow), lambda i: (i, 0, 0)),
        compiler_params=pltpu.CompilerParams(
            dimension_semantics=("parallel",),   # v7x: frames split across the 2 TCs
        ),
    )


@functools.partial(jax.jit, static_argnames=("output_size",))
def preprocess_batch(states_bhwc_uint8: jax.Array, output_size=(84, 84)) -> jax.Array:
    """states: (B, H, W, 3) uint8 RGB -> (B, OH, OW) float32 in [0, 1/255]."""
    b, ih, iw, _ = states_bhwc_uint8.shape
    oh, ow = output_size
    # Layout glue only: HWC -> CHW on uint8 (cast happens inside the kernel).
    x_chw = jnp.transpose(states_bhwc_uint8, (0, 3, 1, 2))          # (B, 3, IH, IW) uint8
    rh_np, rwt_np = _resize_matrices(ih, iw, oh, ow)                 # trace-time constants
    call = _build_preprocess_call(b, ih, iw, oh, ow)
    return call(x_chw, jnp.asarray(rh_np), jnp.asarray(rwt_np))     # (B, OH, OW)


def preprocess(state_hwc_uint8: jax.Array, output_size=(84, 84)) -> jax.Array:
    """state: (H, W, 3) uint8 RGB -> (1, OH, OW) float32 (matches ToTensor CHW)."""
    return preprocess_batch(state_hwc_uint8[None], output_size=output_size)


def _reference(states_bhwc_uint8: np.ndarray, output_size=(84, 84)) -> np.ndarray:
    """Pure-numpy reference, same math and same association order as the kernel."""
    x = np.asarray(states_bhwc_uint8, np.float32)                    # (B, H, W, 3)
    oh, ow = output_size
    ih, iw = x.shape[1], x.shape[2]
    gray = np.floor(
        (x[..., 0] * 19595.0 + x[..., 1] * 38470.0 + x[..., 2] * 7471.0 + 32768.0)
        / 65536.0
    ).astype(np.float32)                                             # (B, IH, IW)
    rh, rwt = _resize_matrices(ih, iw, oh, ow)
    tmp = gray @ rwt                                                 # (B, IH, OW)
    out = np.einsum("oi,bij->boj", rh, tmp)                          # (B, OH, OW)
    return out.astype(np.float32)


if __name__ == "__main__":
    key = jax.random.PRNGKey(0)
    k1, k2 = jax.random.split(key)

    # Single 64x64 RGB uint8 "screen" (module forward takes one frame).
    state = jax.random.randint(k1, (64, 64, 3), 0, 256, dtype=jnp.int32).astype(jnp.uint8)
    # Batched path (typical DQN frame stack of 4), exercises the parallel grid.
    states = jax.random.randint(k2, (4, 64, 64, 3), 0, 256, dtype=jnp.int32).astype(jnp.uint8)

    out1 = jax.block_until_ready(preprocess(state, output_size=(84, 84)))
    outb = jax.block_until_ready(preprocess_batch(states, output_size=(84, 84)))

    assert out1.shape == (1, 84, 84) and out1.dtype == jnp.float32
    assert outb.shape == (4, 84, 84) and outb.dtype == jnp.float32

    ref1 = _reference(np.asarray(state)[None], output_size=(84, 84))
    refb = _reference(np.asarray(states), output_size=(84, 84))
    np.testing.assert_allclose(np.asarray(out1), ref1, rtol=1e-5, atol=1e-6)
    np.testing.assert_allclose(np.asarray(outb), refb, rtol=1e-5, atol=1e-6)

    print("KERNEL_OK")
</pallas_src>

<mosaic_0001>
module attributes {stable_mosaic.version = 11 : i64} {
  func.func @_preprocess_kernel(%arg0: i32, %arg1: memref<1x3x64x64xi8, #tpu.memory_space<vmem>>, %arg2: memref<84x64xf32, #tpu.memory_space<vmem>>, %arg3: memref<64x84xf32, #tpu.memory_space<vmem>>, %arg4: memref<1x84x84xf32, #tpu.memory_space<vmem>>) attributes {dimension_semantics = [#tpu.dimension_semantics<parallel>], iteration_bounds = array<i64: 1>, scalar_prefetch = 0 : i64, scratch_operands = 0 : i64, tpu.core_type = #tpu.core_type<tc>, window_params = [{transform_indices = @transform_0, window_bounds = array<i64: 1, 3, 64, 64>}, {pipeline_mode = #tpu.pipeline_mode<synchronous>, transform_indices = @transform_1, window_bounds = array<i64: 84, 64>}, {pipeline_mode = #tpu.pipeline_mode<synchronous>, transform_indices = @transform_2, window_bounds = array<i64: 64, 84>}, {transform_indices = @transform_3, window_bounds = array<i64: 1, 84, 84>}]} {
    %c0 = arith.constant 0 : index
    %c0_0 = arith.constant 0 : index
    %c0_1 = arith.constant 0 : index
    %c0_2 = arith.constant 0 : index
    %0 = vector.load %arg1[%c0, %c0_0, %c0_1, %c0_2] : memref<1x3x64x64xi8, #tpu.memory_space<vmem>>, vector<1x3x64x64xi8>
    %1 = vector.shape_cast %0 : vector<1x3x64x64xi8> to vector<3x64x64xi8>
    %2 = arith.uitofp %1 : vector<3x64x64xi8> to vector<3x64x64xf32>
    %3 = vector.extract_strided_slice %2 {offsets = [0, 0, 0], sizes = [1, 64, 64], strides = [1, 1, 1]} : vector<3x64x64xf32> to vector<1x64x64xf32>
    %4 = vector.shape_cast %3 : vector<1x64x64xf32> to vector<64x64xf32>
    %5 = vector.extract_strided_slice %2 {offsets = [1, 0, 0], sizes = [1, 64, 64], strides = [1, 1, 1]} : vector<3x64x64xf32> to vector<1x64x64xf32>
    %6 = vector.shape_cast %5 : vector<1x64x64xf32> to vector<64x64xf32>
    %7 = vector.extract_strided_slice %2 {offsets = [2, 0, 0], sizes = [1, 64, 64], strides = [1, 1, 1]} : vector<3x64x64xf32> to vector<1x64x64xf32>
    %8 = vector.shape_cast %7 : vector<1x64x64xf32> to vector<64x64xf32>
    %cst = arith.constant 1.959500e+04 : f32
    %9 = vector.broadcast %cst : f32 to vector<64x64xf32>
    %10 = arith.mulf %4, %9 : vector<64x64xf32>
    %cst_3 = arith.constant 3.847000e+04 : f32
    %11 = vector.broadcast %cst_3 : f32 to vector<64x64xf32>
    %12 = arith.mulf %6, %11 : vector<64x64xf32>
    %13 = arith.addf %10, %12 : vector<64x64xf32>
    %cst_4 = arith.constant 7.471000e+03 : f32
    %14 = vector.broadcast %cst_4 : f32 to vector<64x64xf32>
    %15 = arith.mulf %8, %14 : vector<64x64xf32>
    %16 = arith.addf %13, %15 : vector<64x64xf32>
    %cst_5 = arith.constant 3.276800e+04 : f32
    %17 = vector.broadcast %cst_5 : f32 to vector<64x64xf32>
    %18 = arith.addf %16, %17 : vector<64x64xf32>
    %cst_6 = arith.constant 1.52587891E-5 : f32
    %19 = vector.broadcast %cst_6 : f32 to vector<64x64xf32>
    %20 = arith.mulf %18, %19 : vector<64x64xf32>
    %21 = math.floor %20 : vector<64x64xf32>
    %c0_7 = arith.constant 0 : index
    %c0_8 = arith.constant 0 : index
    %22 = vector.load %arg3[%c0_7, %c0_8] : memref<64x84xf32, #tpu.memory_space<vmem>>, vector<64x84xf32>
    %cst_9 = arith.constant dense<0.000000e+00> : vector<64x84xf32>
    %23 = tpu.matmul %21, %22, %cst_9 {dimension_numbers = #tpu.dot_dimension_numbers<[1], [0], [0], [1], [0, 0, 1, 1], [], []>} : vector<64x64xf32>, vector<64x84xf32>, vector<64x84xf32> -> vector<64x84xf32>
    %c0_10 = arith.constant 0 : index
    %c0_11 = arith.constant 0 : index
    %24 = vector.load %arg2[%c0_10, %c0_11] : memref<84x64xf32, #tpu.memory_space<vmem>>, vector<84x64xf32>
    %cst_12 = arith.constant dense<0.000000e+00> : vector<84x84xf32>
    %25 = tpu.matmul %24, %23, %cst_12 {dimension_numbers = #tpu.dot_dimension_numbers<[1], [0], [0], [1], [0, 0, 1, 1], [], []>} : vector<84x64xf32>, vector<64x84xf32>, vector<84x84xf32> -> vector<84x84xf32>
    %c0_13 = arith.constant 0 : index
    %c0_14 = arith.constant 0 : index
    %c0_15 = arith.constant 0 : index
    %26 = vector.load %arg4[%c0_13, %c0_14, %c0_15] : memref<1x84x84xf32, #tpu.memory_space<vmem>>, vector<1x84x84xf32>
    %27 = vector.shape_cast %26 : vector<1x84x84xf32> to vector<84x84xf32>
    %28 = vector.shape_cast %25 : vector<84x84xf32> to vector<1x84x84xf32>
    tpu.vector_store %arg4[%c0_13, %c0_14, %c0_15], %28 {strides = array<i32>} : memref<1x84x84xf32, #tpu.memory_space<vmem>>, vector<1x84x84xf32>,
    return
  }
  func.func @transform_0(%arg0: i32) -> (i32, i32, i32, i32) {
    %c0_i32 = arith.constant 0 : i32
    %c0_i32_0 = arith.constant 0 : i32
    %c0_i32_1 = arith.constant 0 : i32
    %c0_i32_2 = arith.constant 0 : i32
    return %arg0, %c0_i32, %c0_i32_0, %c0_i32_1 : i32, i32, i32, i32
  }
  func.func @transform_1(%arg0: i32) -> (i32, i32) {
    %c0_i32 = arith.constant 0 : i32
    %c0_i32_0 = arith.constant 0 : i32
    %c0_i32_1 = arith.constant 0 : i32
    return %c0_i32, %c0_i32_0 : i32, i32
  }
  func.func @transform_2(%arg0: i32) -> (i32, i32) {
    %c0_i32 = arith.constant 0 : i32
    %c0_i32_0 = arith.constant 0 : i32
    %c0_i32_1 = arith.constant 0 : i32
    return %c0_i32, %c0_i32_0 : i32, i32
  }
  func.func @transform_3(%arg0: i32) -> (i32, i32, i32) {
    %c0_i32 = arith.constant 0 : i32
    %c0_i32_0 = arith.constant 0 : i32
    %c0_i32_1 = arith.constant 0 : i32
    return %arg0, %c0_i32, %c0_i32_0 : i32, i32, i32
  }
}

</mosaic_0001>

<bundles_post_ra>
// kernel: preprocess_batch.1
= control target key start
LH: loop header
LB: loop body
LE: loop exit
PB: predicated region body
PF: predicated region fallthrough
CT: control target
= control target key end

     0   :  { %8 = vsyncpa [#allocation3], 0  ;;  %s938_s0 = inlined_call_operand.hbm [shape: u8[1,3,64,64], index: 0, kind: input, shape index: {}]   ;;  %s939_s1 = inlined_call_operand.hbm [shape: f32[84,64], index: 1, kind: input, shape index: {}]   ;;  %s940_s2 = inlined_call_operand.hbm [shape: f32[64,84], index: 2, kind: input, shape index: {}]   ;;  %s941_s3 = inlined_call_operand.vmem [shape: f32[1,84,84], index: 3, kind: output, shape index: {}]  }
   0x1   :  { %9 = vsyncpa [#allocation5], 0  ;;  %s763_s12 = smov [#allocation4]   ;;  %s764_s14 = smov [#allocation2]  }
   0x2   :  { %s27_s13 = sshll.u32 %s763_s12, 4  ;;  %s15_s15 = sshll.u32 %s764_s14, 4  ;;  %s28_s13 = int_to_ptr.vmem [resolvable:$true] %s27_s13  ;;  %s791_s15 = int_to_ptr.vmem [resolvable:$true] %s15_s15 }
   0x3   :  { %s693_s18 = scalar_lea.hbm %s939_s1, 1408 }
   0x4   :  { %p694_p0 = scmp.ne.s32.totalorder %s939_s1, %s693_s18  ;;  %p697_p1 = scmp.lt.u32.totalorder %s693_s18, %s939_s1 }
   0x6   :  { %p699_p2 = pnand %p697_p1, %p694_p0 }
   0x8   :  { %702 = shalt.err (!%p699_p2)
}
   0x9   :  { %s703_s23 = scalar_lea.vmem %s28_s13, 1408  ;;  %p708_p4 = scmp.lt.s32.totalorder %s28_s13, %s28_s13 }
   0xa   :  { %p704_p3 = scmp.ne.s32.totalorder %s28_s13, %s703_s23  ;;  %p709_p5 = scmp.lt.s32.totalorder %s703_s23, %s703_s23 }
   0xc   :  { %p710_p6 = por %p709_p5, %p708_p4 }
   0xe   :  { %p711_p7 = pnand %p710_p6, %p704_p3 }
  0x10   :  { %714 = shalt.err (!%p711_p7)
}
  0x11   :  { %s765_s24 = smov 128   ;;  %s766_s25 = smov 8  }
  0x12   :  { %33 = dma.hbm_to_vmem [thread:$0]  %s939_s1, 1408, %s28_s13, [#allocation5], %s765_s24, %s765_s24, %s766_s25  }
  0x13   :  { %s715_s30 = scalar_lea.hbm %s938_s0, 768 }
  0x14   :  { %p716_p8 = scmp.ne.s32.totalorder %s938_s0, %s715_s30  ;;  %p719_p9 = scmp.lt.u32.totalorder %s715_s30, %s938_s0 }
  0x16   :  { %p721_p10 = pnand %p719_p9, %p716_p8 }
  0x18   :  { %724 = shalt.err (!%p721_p10)
}
  0x19   :  { %s725_s8 = scalar_lea.vmem %s791_s15, 768  ;;  %p730_p12 = scmp.lt.s32.totalorder %s791_s15, %s791_s15 }
  0x1a   :  { %p726_p11 = scmp.ne.s32.totalorder %s791_s15, %s725_s8  ;;  %p731_p13 = scmp.lt.s32.totalorder %s725_s8, %s725_s8 }
  0x1c   :  { %p732_p0 = por %p731_p13, %p730_p12 }
  0x1e   :  { %p733_p1 = pnand %p732_p0, %p726_p11 }
  0x20   :  { %736 = shalt.err (!%p733_p1)
}
  0x21   :  { %21 = dma.hbm_to_vmem [thread:$0]  %s938_s0, 768, %s791_s15, [#allocation3], %s765_s24, %s765_s24, %s766_s25  }
  0x22   :  { %s767_s10 = smov [#allocation6]   ;;  %s737_s14 = scalar_lea.hbm %s940_s2, 1024 }
  0x23   :  { %s39_s11 = sshll.u32 %s767_s10, 4  ;;  %p738_p2 = scmp.ne.s32.totalorder %s940_s2, %s737_s14  ;;  %s40_s11 = int_to_ptr.vmem [resolvable:$true] %s39_s11 }
  0x24   :  { %p741_p3 = scmp.lt.u32.totalorder %s737_s14, %s940_s2 }
  0x26   :  { %p743_p4 = pnand %p741_p3, %p738_p2 }
  0x28   :  { %746 = shalt.err (!%p743_p4)
}
  0x29   :  { %s747_s20 = scalar_lea.vmem %s40_s11, 1024  ;;  %p752_p6 = scmp.lt.s32.totalorder %s40_s11, %s40_s11 }
  0x2a   :  { %p748_p5 = scmp.ne.s32.totalorder %s40_s11, %s747_s20  ;;  %p753_p7 = scmp.lt.s32.totalorder %s747_s20, %s747_s20 }
  0x2c   :  { %p754_p8 = por %p753_p7, %p752_p6 }
  0x2e   :  { %p755_p9 = pnand %p754_p8, %p748_p5 }
  0x30   :  { %758 = shalt.err (!%p755_p9)
}
  0x31   :  { %45 = dma.hbm_to_vmem [thread:$0]  %s940_s2, 1024, %s40_s11, [#allocation5], %s765_s24, %s765_s24, %s766_s25  }
  0x32   :  { %759 = dma.done.wait [#allocation3], 768  }
  0x33   :  { %760 = vsyncadd [#allocation3], 4294966528 }
  0x34   :  { %761 = dma.done.wait [#allocation5], 2432  }
  0x35   :  { %762 = vsyncadd [#allocation5], 4294964864  ;;  %v197_v0 = vld [vmem:[#allocation6] sm:$0xff]  ;;  %v198_v1 = vld [vmem:[#allocation6 + $0x8] sm:$0xff]  ;;  %vm205_vm0 = vcmask 523264   ;;  %vm769_vm1 = vmmov 0  }
  0x36   :  { %v199_v2 = vld [vmem:[#allocation6 + $0x10] sm:$0xff]  ;;  %v649_v3 = vpack.c.bf16 %v198_v1, %v197_v0  ;;  %v200_v4 = vld [vmem:[#allocation6 + $0x18] sm:$0xff]  ;;  %v201_v5 = vld [vmem:[#allocation6 + $0x20] sm:$0xff]  ;;  %vm499_vm2 = vcmask 687104   ;;  %vm510_vm3 = vcmask 683008  }
  0x37   :  { %v202_v6 = vld [vmem:[#allocation6 + $0x28] sm:$0xff]  ;;  %v653_v7 = vpack.c.bf16 %v200_v4, %v199_v2  ;;  %v203_v9 = vld [vmem:[#allocation6 + $0x30] sm:$0xff]  ;;  %v204_v10 = vld [vmem:[#allocation6 + $0x38] sm:$0xff] }
  0x38   :  { %v657_v8 = vpack.c.bf16 %v202_v6, %v201_v5  ;;  %v55_v11 = vld [vmem:[#allocation2] sm:$0xff]  ;;  %650 = vmatprep.subr.bf16.mxu0 %v649_v3  ;;  %v843_v12 = vpack.c.bf16 %v204_v10, %v203_v9  ;;  %v57_v13 = vld [vmem:[#allocation2 + $0x10] sm:$0xff]  ;;  %v845_v42 = vld [vmem:[#allocation2 + $0x8] sm:$0xff] }
  0x39   :  { %v59_v14 = vld [vmem:[#allocation2 + $0x20] sm:$0xff]  ;;  %v61_v15 = vunpack.c.0.s8 %v55_v11  ;;  %v62_v16 = vunpack.c.1.s8 %v55_v11  ;;  %v63_v17 = vunpack.c.2.s8 %v55_v11  ;;  %652 = vmatpush3.bf16.msra.mxu0 %v649_v3  ;;  %v69_v18 = vunpack.c.0.s8 %v57_v13  ;;  %v847_v55 = vld [vmem:[#allocation2 + $0x18] sm:$0xff]  ;;  %v849_v56 = vld [vmem:[#allocation2 + $0x28] sm:$0xff] }
  0x3a   :  { %v77_v19 = vunpack.c.0.s8 %v59_v14  ;;  %v70_v20 = vunpack.c.1.s8 %v57_v13  ;;  %v78_v21 = vunpack.c.1.s8 %v59_v14  ;;  %654 = vmatprep.subr.bf16.mxu0 %v653_v7  ;;  %v71_v24 = vunpack.c.2.s8 %v57_v13 }
  0x3b   :  { %v85_v22 = vand.u32 255, %v61_v15  ;;  %v86_v23 = vand.u32 255, %v62_v16  ;;  %v79_v25 = vunpack.c.2.s8 %v59_v14  ;;  %v93_v26 = vand.u32 255, %v69_v18 }
  0x3c   :  { %v101_v27 = vand.u32 255, %v77_v19  ;;  %v94_v28 = vand.u32 255, %v70_v20  ;;  %v102_v29 = vand.u32 255, %v78_v21  ;;  %v87_v32 = vand.u32 255, %v63_v17 }
  0x3d   :  { %v109_v30 = vcvt.s32.f32 %v85_v22  ;;  %v110_v31 = vcvt.s32.f32 %v86_v23  ;;  %v95_v33 = vand.u32 255, %v71_v24  ;;  %656 = vmatpush3.bf16.msra.mxu0 %v653_v7  ;;  %v117_v34 = vcvt.s32.f32 %v93_v26 }
  0x3e   :  { %v125_v35 = vcvt.s32.f32 %v101_v27  ;;  %v118_v36 = vcvt.s32.f32 %v94_v28  ;;  %v126_v37 = vcvt.s32.f32 %v102_v29  ;;  %658 = vmatprep.subr.bf16.mxu0 %v657_v8  ;;  %v103_v40 = vand.u32 255, %v79_v25 }
  0x3f   :  { %v133_v38 = vmul.f32 19595.0, %v109_v30  ;;  %v134_v39 = vmul.f32 19595.0, %v110_v31  ;;  %v111_v41 = vcvt.s32.f32 %v87_v32  ;;  %v141_v43 = vmul.f32 38470.0, %v117_v34 }
  0x40   :  { %v157_v44 = vmul.f32 7471.0, %v125_v35  ;;  %v142_v45 = vmul.f32 38470.0, %v118_v36  ;;  %v119_v46 = vcvt.s32.f32 %v95_v33  ;;  %v158_v47 = vmul.f32 7471.0, %v126_v37 }
  0x41   :  { %v127_v48 = vcvt.s32.f32 %v103_v40  ;;  %v135_v49 = vmul.f32 19595.0, %v111_v41  ;;  %v64_v50 = vunpack.c.3.s8 %v55_v11  ;;  %660 = vmatpush3.bf16.msra.mxu0 %v657_v8  ;;  %v149_v51 = vadd.f32 %v141_v43, %v133_v38 }
  0x42   :  { %v150_v52 = vadd.f32 %v142_v45, %v134_v39  ;;  %v143_v53 = vmul.f32 38470.0, %v119_v46  ;;  %v72_v54 = vunpack.c.3.s8 %v57_v13  ;;  %662 = vmatprep.subr.bf16.mxu0 %v843_v12  ;;  %v80_v58 = vunpack.c.3.s8 %v59_v14 }
  0x43   :  { %v159_v57 = vmul.f32 7471.0, %v127_v48  ;;  %v88_v59 = vand.u32 255, %v64_v50  ;;  %v65_v60 = vunpack.c.0.s8 %v845_v42  ;;  %v165_v61 = vadd.f32 %v157_v44, %v149_v51 }
  0x44   :  { %v166_v62 = vadd.f32 %v158_v47, %v150_v52  ;;  %v151_v63 = vadd.f32 %v143_v53, %v135_v49  ;;  %v96_v0 = vand.u32 255, %v72_v54  ;;  %v104_v1 = vand.u32 255, %v80_v58 }
  0x45   :  { %v112_v2 = vcvt.s32.f32 %v88_v59  ;;  %v73_v3 = vunpack.c.0.s8 %v847_v55  ;;  %v81_v4 = vunpack.c.0.s8 %v849_v56  ;;  %664 = vmatpush3.bf16.msra.mxu0 %v843_v12  ;;  %v173_v5 = vadd.f32 32768.0, %v165_v61 }
  0x46   :  { %v174_v6 = vadd.f32 32768.0, %v166_v62  ;;  %v167_v7 = vadd.f32 %v159_v57, %v151_v63  ;;  %v120_v8 = vcvt.s32.f32 %v96_v0  ;;  %v128_v9 = vcvt.s32.f32 %v104_v1 }
  0x47   :  { %v136_v10 = vmul.f32 19595.0, %v112_v2  ;;  %v89_v11 = vand.u32 255, %v65_v60  ;;  %v97_v13 = vand.u32 255, %v73_v3  ;;  %v181_v14 = vmul.f32 1.5258789e-05, %v173_v5 }
  0x48   :  { %v182_v15 = vmul.f32 1.5258789e-05, %v174_v6  ;;  %v175_v16 = vadd.f32 32768.0, %v167_v7  ;;  %v144_v17 = vmul.f32 38470.0, %v120_v8  ;;  %v160_v18 = vmul.f32 7471.0, %v128_v9 }
  0x49   :  { %v105_v19 = vand.u32 255, %v81_v4  ;;  %v113_v20 = vcvt.s32.f32 %v89_v11  ;;  %v121_v21 = vcvt.s32.f32 %v97_v13  ;;  %v189_v22 = vfloor.f32 %v181_v14 }
  0x4a   :  { %v190_v23 = vfloor.f32 %v182_v15  ;;  %v183_v24 = vmul.f32 1.5258789e-05, %v175_v16  ;;  %v152_v12 = vadd.f32 %v144_v17, %v136_v10  ;;  %v66_v28 = vunpack.c.1.s8 %v845_v42 }
  0x4b   :  { %v129_v25 = vcvt.s32.f32 %v105_v19  ;;  %v137_v26 = vmul.f32 19595.0, %v113_v20  ;;  %v145_v27 = vmul.f32 38470.0, %v121_v21  ;;  %588 = vmatprep.mubr.msk.f32.mxu0 %vm205_vm0, %v189_v22  ;;  %v74_v31 = vunpack.c.1.s8 %v847_v55 }
  0x4c   :  { %v191_v29 = vfloor.f32 %v183_v24  ;;  %v168_v30 = vadd.f32 %v160_v18, %v152_v12  ;;  %v82_v32 = vunpack.c.1.s8 %v849_v56  ;;  %589 = vmatmul.mubr.msk.f32.vlgmr.msra.gmra.mrb[0].mxu0 %vm205_vm0, %v190_v23  ;;  %v90_v35 = vand.u32 255, %v66_v28 }
  0x4d   :  { %v153_v33 = vadd.f32 %v145_v27, %v137_v26  ;;  %v161_v34 = vmul.f32 7471.0, %v129_v25  ;;  %v67_v36 = vunpack.c.2.s8 %v845_v42  ;;  %v98_v38 = vand.u32 255, %v74_v31 }
  0x4e   :  { %591 = vmatprep.mubr.msk.f32.mxu0 %vm205_vm0, %v191_v29  ;;  %v176_v37 = vadd.f32 32768.0, %v168_v30  ;;  %v106_v39 = vand.u32 255, %v82_v32  ;;  %v75_v40 = vunpack.c.2.s8 %v847_v55  ;;  %v114_v43 = vcvt.s32.f32 %v90_v35 }
  0x4f   :  { %v169_v41 = vadd.f32 %v161_v34, %v153_v33  ;;  %v83_v44 = vunpack.c.2.s8 %v849_v56  ;;  %v91_v45 = vand.u32 255, %v67_v36  ;;  %v122_v47 = vcvt.s32.f32 %v98_v38 }
  0x50   :  { %v184_v46 = vmul.f32 1.5258789e-05, %v176_v37  ;;  %v130_v48 = vcvt.s32.f32 %v106_v39  ;;  %v99_v49 = vand.u32 255, %v75_v40  ;;  %v138_v51 = vmul.f32 19595.0, %v114_v43  ;;  %v338_v40 = vld [vmem:[#allocation4 + $0x18] sm:$0xff]  ;;  %v339_v43 = vld [vmem:[#allocation4 + $0x20] sm:$0xff] }
  0x51   :  { %v177_v50 = vadd.f32 32768.0, %v169_v41  ;;  %v107_v52 = vand.u32 255, %v83_v44  ;;  %v115_v53 = vcvt.s32.f32 %v91_v45  ;;  %v146_v57 = vmul.f32 38470.0, %v122_v47  ;;  %v335_v41 = vld [vmem:[#allocation4] sm:$0xff]  ;;  %v336_v44 = vld [vmem:[#allocation4 + $0x8] sm:$0xff] }
  0x52   :  { %v192_v54 = vfloor.f32 %v184_v46  ;;  %v162_v58 = vmul.f32 7471.0, %v130_v48  ;;  %v123_v59 = vcvt.s32.f32 %v99_v49  ;;  %v68_v63 = vunpack.c.3.s8 %v845_v42  ;;  %v340_v45 = vld [vmem:[#allocation4 + $0x28] sm:$0xff]  ;;  %v337_v46 = vld [vmem:[#allocation4 + $0x10] sm:$0xff]  ;;  %v342_v48 = vld [vmem:[#allocation4 + $0x38] sm:$0xff] }
  0x53   :  { %v185_v60 = vmul.f32 1.5258789e-05, %v177_v50  ;;  %v131_v61 = vcvt.s32.f32 %v107_v52  ;;  %v139_v62 = vmul.f32 19595.0, %v115_v53  ;;  %v154_v0 = vadd.f32 %v146_v57, %v138_v51  ;;  %v341_v47 = vld [vmem:[#allocation4 + $0x30] sm:$0xff]  ;;  %v343_v49 = vld [vmem:[#allocation4 + $0x40] sm:$0xff]  ;;  %v344_v50 = vld [vmem:[#allocation4 + $0x48] sm:$0xff] }
  0x54   :  { %592 = vmatmul.mubr.msk.f32.gmra.mrb[2].mxu0 %vm205_vm0, %v192_v54  ;;  %v147_v1 = vmul.f32 38470.0, %v123_v59  ;;  %v76_v2 = vunpack.c.3.s8 %v847_v55  ;;  %v84_v3 = vunpack.c.3.s8 %v849_v56  ;;  %v92_v6 = vand.u32 255, %v68_v63  ;;  %v345_v51 = vld [vmem:[#allocation4 + $0x50] sm:$0xf] }
  0x55   :  { %v193_v4 = vfloor.f32 %v185_v60  ;;  %v163_v5 = vmul.f32 7471.0, %v131_v61  ;;  %v170_v7 = vadd.f32 %v162_v58, %v154_v0  ;;  %v768_v26 = vmov 0.0|0.0  }
  0x56   :  { %v155_v8 = vadd.f32 %v147_v1, %v139_v62  ;;  %v100_v9 = vand.u32 255, %v76_v2  ;;  %v108_v10 = vand.u32 255, %v84_v3  ;;  %v116_v11 = vcvt.s32.f32 %v92_v6  ;;  %665 = vmatprep.subr.bf16.mxu0 %v768_v26  ;;  %677 = vmatprep.subr.bf16.mxu1 %v768_v26 }
  0x57   :  { %594 = vmatprep.mubr.msk.f32.mxu0 %vm205_vm0, %v193_v4  ;;  %v178_v13 = vadd.f32 32768.0, %v170_v7  ;;  %v770_v27 = vmov 0.0  }
  0x58   :  { %v171_v42 = vadd.f32 %v163_v5, %v155_v8  ;;  %v124_v14 = vcvt.s32.f32 %v100_v9  ;;  %v132_v15 = vcvt.s32.f32 %v108_v10  ;;  %v140_v16 = vmul.f32 19595.0, %v116_v11  ;;  %625 = vmatprep.mubr.msk.f32.mxu1 %vm769_vm1, %v770_v27 }
  0x59   :  { %v186_v17 = vmul.f32 1.5258789e-05, %v178_v13 }
  0x5a   :  { %v179_v18 = vadd.f32 32768.0, %v171_v42  ;;  %v148_v55 = vmul.f32 38470.0, %v124_v14  ;;  %v164_v19 = vmul.f32 7471.0, %v132_v15 }
  0x5b   :  { %v194_v56 = vfloor.f32 %v186_v17 }
  0x5c   :  { %v187_v20 = vmul.f32 1.5258789e-05, %v179_v18  ;;  %v156_v21 = vadd.f32 %v148_v55, %v140_v16 }
  0x5d   :  { %595 = vmatmul.mubr.msk.f32.gmra.mrb[4].mxu0 %vm205_vm0, %v194_v56 }
  0x5e   :  { %v195_v22 = vfloor.f32 %v187_v20  ;;  %v172_v23 = vadd.f32 %v164_v19, %v156_v21 }
  0x60   :  { %597 = vmatprep.mubr.msk.f32.mxu0 %vm205_vm0, %v195_v22  ;;  %v180_v24 = vadd.f32 32768.0, %v172_v23 }
  0x62   :  { %v188_v12 = vmul.f32 1.5258789e-05, %v180_v24 }
  0x64   :  { %v196_v25 = vfloor.f32 %v188_v12 }
  0x66   :  { %598 = vmatmul.mubr.msk.f32.gmra.mrb[6].mxu0 %vm205_vm0, %v196_v25 }
  0x67   :  { %616 = vmatprep.mubr.msk.f32.mxu0 %vm769_vm1, %v770_v27 }
 0x11f   :  { %v590_v28 = vpop.f32.mrb[0].mxu0 }
 0x120   :  { %v296_v29 = vpop.f32.mrb[1].mxu0 }
 0x121   :  { %v666_v30 = vpack.c.bf16 %v590_v28, %v296_v29 }
 0x123   :  { %667 = vmatpush3.bf16.msra.mxu0 %v666_v30  ;;  %681 = vmatpush3.bf16.msra.mxu1 %v666_v30 }
 0x124   :  { %668 = vmatprep.subr.bf16.mxu0 %v768_v26  ;;  %678 = vmatprep.subr.bf16.mxu1 %v768_v26 }
 0x127   :  { %v593_v31 = vpop.f32.mrb[2].mxu0 }
 0x128   :  { %v306_v32 = vpop.f32.mrb[3].mxu0 }
 0x129   :  { %v669_v33 = vpack.c.bf16 %v593_v31, %v306_v32 }
 0x12b   :  { %670 = vmatpush3.bf16.msra.mxu0 %v669_v33  ;;  %682 = vmatpush3.bf16.msra.mxu1 %v669_v33 }
 0x12c   :  { %671 = vmatprep.subr.bf16.mxu0 %v768_v26  ;;  %679 = vmatprep.subr.bf16.mxu1 %v768_v26 }
 0x130   :  { %v596_v34 = vpop.f32.mrb[4].mxu0 }
 0x131   :  { %v316_v35 = vpop.f32.mrb[5].mxu0 }
 0x132   :  { %v672_v36 = vpack.c.bf16 %v596_v34, %v316_v35 }
 0x134   :  { %673 = vmatpush3.bf16.msra.mxu0 %v672_v36  ;;  %683 = vmatpush3.bf16.msra.mxu1 %v672_v36 }
 0x135   :  { %674 = vmatprep.subr.bf16.mxu0 %v768_v26  ;;  %680 = vmatprep.subr.bf16.mxu1 %v768_v26 }
 0x139   :  { %v599_v37 = vpop.f32.mrb[6].mxu0 }
 0x13a   :  { %v326_v38 = vpop.f32.mrb[7].mxu0 }
 0x13b   :  { %v675_v39 = vpack.c.bf16 %v599_v37, %v326_v38 }
 0x13d   :  { %676 = vmatpush3.bf16.msra.mxu0 %v675_v39  ;;  %684 = vmatpush3.bf16.msra.mxu1 %v675_v39 }
 0x140   :  { %626 = vmatmul.mubr.msk.f32.vlgmr.msra.gmra.mrb[0].mxu1 %vm205_vm0, %v338_v40  ;;  %617 = vmatmul.mubr.msk.f32.vlgmr.msra.gmra.mrb[8].mxu0 %vm205_vm0, %v335_v41 }
 0x141   :  { %628 = vmatprep.mubr.msk.f32.mxu1 %vm769_vm1, %v770_v27  ;;  %619 = vmatprep.mubr.msk.f32.mxu0 %vm769_vm1, %v770_v27 }
 0x144   :  { %629 = vmatmul.mubr.msk.f32.gmra.mrb[2].mxu1 %vm205_vm0, %v339_v43  ;;  %620 = vmatmul.mubr.msk.f32.gmra.mrb[10].mxu0 %vm205_vm0, %v336_v44 }
 0x145   :  { %631 = vmatprep.mubr.msk.f32.mxu1 %vm769_vm1, %v770_v27  ;;  %622 = vmatprep.mubr.msk.f32.mxu0 %vm769_vm1, %v770_v27 }
 0x148   :  { %632 = vmatmul.mubr.msk.f32.gmra.mrb[4].mxu1 %vm205_vm0, %v340_v45  ;;  %623 = vmatmul.mubr.msk.f32.gmra.mrb[12].mxu0 %vm205_vm0, %v337_v46 }
 0x149   :  { %634 = vmatprep.mubr.msk.f32.mxu1 %vm769_vm1, %v770_v27 }
 0x14c   :  { %635 = vmatmul.mubr.msk.f32.gmra.mrb[6].mxu1 %vm205_vm0, %v341_v47 }
 0x14d   :  { %637 = vmatprep.mubr.msk.f32.mxu1 %vm769_vm1, %v770_v27 }
 0x150   :  { %638 = vmatmul.mubr.msk.f32.gmra.mrb[8].mxu1 %vm205_vm0, %v342_v48 }
 0x151   :  { %640 = vmatprep.mubr.msk.f32.mxu1 %vm769_vm1, %v770_v27 }
 0x154   :  { %641 = vmatmul.mubr.msk.f32.gmra.mrb[10].mxu1 %vm205_vm0, %v343_v49 }
 0x155   :  { %643 = vmatprep.mubr.msk.f32.mxu1 %vm769_vm1, %v770_v27 }
 0x158   :  { %644 = vmatmul.mubr.msk.f32.gmra.mrb[12].mxu1 %vm205_vm0, %v344_v50 }
 0x159   :  { %646 = vmatprep.mubr.msk.f32.mxu1 %vm769_vm1, %v770_v27 }
 0x15c   :  { %647 = vmatmul.mubr.msk.f32.gmra.mrb[14].mxu1 %vm205_vm0, %v345_v51 }
 0x213   :  { %v460_v52 = vpop.f32.mrb[0].mxu1  ;;  %v445_v53 = vpop.f32.mrb[8].mxu0 }
 0x214   :  { %503 = vst.msk [vmem:[%s941_s3 + $0x18] sm:$0xff] %vm499_vm2, %v460_v52  ;;  %v627_v54 = vpop.f32.mrb[1].mxu1  ;;  %500 = vst.msk [vmem:[%s941_s3] sm:$0xff] %vm499_vm2, %v445_v53  ;;  %v618_v57 = vpop.f32.mrb[9].mxu0 }
 0x217   :  { %v465_v58 = vpop.f32.mrb[2].mxu1  ;;  %v450_v59 = vpop.f32.mrb[10].mxu0 }
 0x218   :  { %504 = vst.msk [vmem:[%s941_s3 + $0x20] sm:$0xff] %vm499_vm2, %v465_v58  ;;  %v630_v60 = vpop.f32.mrb[3].mxu1  ;;  %501 = vst.msk [vmem:[%s941_s3 + $0x8] sm:$0xff] %vm499_vm2, %v450_v59  ;;  %v621_v61 = vpop.f32.mrb[11].mxu0 }
 0x21b   :  { %v470_v62 = vpop.f32.mrb[4].mxu1  ;;  %v455_v63 = vpop.f32.mrb[12].mxu0 }
 0x21c   :  { %505 = vst.msk [vmem:[%s941_s3 + $0x28] sm:$0xff] %vm499_vm2, %v470_v62  ;;  %v633_v0 = vpop.f32.mrb[5].mxu1  ;;  %502 = vst.msk [vmem:[%s941_s3 + $0x10] sm:$0xff] %vm499_vm2, %v455_v63  ;;  %v624_v1 = vpop.f32.mrb[13].mxu0 }
 0x21f   :  { %v475_v2 = vpop.f32.mrb[6].mxu1 }
 0x220   :  { %506 = vst.msk [vmem:[%s941_s3 + $0x30] sm:$0xff] %vm499_vm2, %v475_v2  ;;  %v636_v3 = vpop.f32.mrb[7].mxu1 }
 0x223   :  { %v480_v4 = vpop.f32.mrb[8].mxu1 }
 0x224   :  { %507 = vst.msk [vmem:[%s941_s3 + $0x38] sm:$0xff] %vm499_vm2, %v480_v4  ;;  %v639_v5 = vpop.f32.mrb[9].mxu1 }
 0x227   :  { %v485_v6 = vpop.f32.mrb[10].mxu1 }
 0x228   :  { %508 = vst.msk [vmem:[%s941_s3 + $0x40] sm:$0xff] %vm499_vm2, %v485_v6  ;;  %v642_v7 = vpop.f32.mrb[11].mxu1 }
 0x22b   :  { %v490_v8 = vpop.f32.mrb[12].mxu1 }
 0x22c   :  { %509 = vst.msk [vmem:[%s941_s3 + $0x48] sm:$0xff] %vm499_vm2, %v490_v8  ;;  %v645_v9 = vpop.f32.mrb[13].mxu1 }
 0x22f   :  { %v495_v10 = vpop.f32.mrb[14].mxu1 }
 0x230   :  { %511 = vst.msk [vmem:[%s941_s3 + $0x50] sm:$0xf] %vm510_vm3, %v495_v10  ;;  %v648_v11 = vpop.f32.mrb[15].mxu1 }
 0x231   :  { %516 = vsyncpa [#allocation3], 1 }
 0x232   :  { %517 = vsyncpa [#allocation5], 1 }

</bundles_post_ra>
